<compile_context>
chip_gen: v7x
topology: tpu7x:2x2x1
jax: 0.10.0
libtpu: 0.0.40
codegen_flags: <defaults>
</compile_context>

<pallas_src>
import math

import jax
import jax.numpy as jnp
from jax import lax
from jax.experimental import pallas as pl
from jax.experimental.pallas import tpu as pltpu

NUM_CLASSES = 4          # num_classes (no-object class index is NUM_CLASSES)
EOS_COEF = 0.1           # register_buffer('empty_weight'): ones(C+1), last = eos_coef (baked in)
B = 2                    # batch
Q = 8                    # number of object queries
L = NUM_CLASSES + 1      # logits dim
MMAX = 4                 # max targets per image (padded)

SLAB_ROWS = Q + MMAX     # pred query rows | matched-target rows
SLAB_COLS = 32           # lane-padded feature width

# slab column map, pred rows 0:Q:
#   0:L logits | L:L+4 box(cxcywh) | L+4:L+7 size | L+7:L+9 offset | L+9:L+10 depth
# slab column map, target rows Q:Q+M:
#   16 label | 17:21 box | 21:24 size | 24:26 offset | 26 depth | 27 angle
#   28 src_idx | 29 tgt_idx | 30 num_targets (matcher meta, exact ints in f32)
C_PRED0, C_PRED1 = L, L + 10          # pred box|size|offset|depth  (5:15)
C_TGT0 = 16                           # target label column
C_TGTF0, C_TGTF1 = 17, 27             # target box|size|offset|depth
C_SRC_IDX, C_TGT_IDX, C_CNT = 28, 29, 30

_LOG_07 = math.log(0.7)  # softmax-prob threshold of the cardinality metric, in log space


def _criterion_kernel(slab_ref, out_ref):
    slab = slab_ref[...]                                   # [B, Q+M, 32] f32
    b = slab.shape[0]
    q, m, l = Q, MMAX, L

    # ---- matcher meta (stored as f32 in the target rows) --------------------
    tgt_rows = slab[:, q:q + m, :]                         # [B, M, 32]
    src_i = tgt_rows[:, :, C_SRC_IDX:C_SRC_IDX + 1]        # [B, M, 1] matched query idx
    tgt_i = tgt_rows[:, :, C_TGT_IDX:C_TGT_IDX + 1]        # [B, M, 1] matched target idx
    cnt = tgt_rows[:, :, C_CNT:C_CNT + 1]                  # [B, M, 1] num targets / image

    pair_iota = lax.broadcasted_iota(jnp.int32, (b, m, 1), 1).astype(jnp.float32)
    validf = (pair_iota < cnt).astype(jnp.float32)         # [B, M, 1] valid matched pair

    n_valid = jnp.sum(validf)
    # TODO(synk): no all_reduce / world_size division of num_boxes (single device).
    num_boxes = jnp.maximum(n_valid, 1.0)
    inv_nb = 1.0 / num_boxes                               # exact divide (one scalar, free)

    # ---- single fused gather (replaces all gather/scatter + 6 einsums) ------
    # 2-hot row per matched pair: picks pred row src_idx (data in cols 0:15) and
    # target row Q+tgt_idx (data in cols 16:31) in one batched MXU contraction.
    k_iota = lax.broadcasted_iota(jnp.int32, (b, m, q + m), 2).astype(jnp.float32)
    oh = ((jnp.abs(k_iota - src_i) < 0.5).astype(jnp.float32) +
          (jnp.abs(k_iota - (float(q) + tgt_i)) < 0.5).astype(jnp.float32)) * validf
    gathered = jnp.einsum('bjk,bkf->bjf', oh, slab,
                          preferred_element_type=jnp.float32)      # [B, M, 32]

    logit_m = gathered[:, :, 0:l]                          # matched-query logits
    label_m = gathered[:, :, C_TGT0:C_TGT0 + 1]            # matched target label

    # ---------------- loss_labels: weighted cross entropy -------------------
    logits = slab[:, 0:q, 0:l]                             # [B, Q, L]
    mx = jnp.max(logits, axis=-1, keepdims=True)
    lse = mx + jnp.log(jnp.sum(jnp.exp(logits - mx), axis=-1, keepdims=True))
    g_all = lse - logits[:, :, l - 1:l]                    # per-query no-object NLL

    mx_m = jnp.max(logit_m, axis=-1, keepdims=True)
    lse_m = mx_m + jnp.log(jnp.sum(jnp.exp(logit_m - mx_m), axis=-1, keepdims=True))
    cls_iota = lax.broadcasted_iota(jnp.int32, (b, m, l), 2).astype(jnp.float32)
    lab_oh = (jnp.abs(cls_iota - label_m) < 0.5).astype(jnp.float32)
    x_m = jnp.sum(logit_m * lab_oh, axis=-1, keepdims=True)  # logit at target class
    g_m = lse_m - logit_m[:, :, l - 1:l]

    # matched queries: weight 1.0; unmatched queries: no-object class, weight EOS_COEF
    ce_matched = jnp.sum((lse_m - x_m) * validf)
    # assumes src_idx has no duplicates among valid rows (Hungarian matching property)
    ce_unmatched = EOS_COEF * (jnp.sum(g_all) - jnp.sum(g_m * validf))
    w_sum = n_valid + EOS_COEF * (float(b * q) - n_valid)
    loss_ce = (ce_matched + ce_unmatched) / w_sum          # exact divide

    # class_error = 100 - top1 accuracy over matched predictions
    # (ties on the top logit count as correct; torch argmax picks a single index).
    is_top1 = (x_m >= mx_m).astype(jnp.float32) * validf
    class_error = 100.0 - 100.0 * jnp.sum(is_top1) * inv_nb

    # ---------------- loss_cardinality (log space, static fg slice) ---------
    max_fg = jnp.max(logits[:, :, 0:l - 1], axis=-1, keepdims=True)
    is_obj = ((max_fg - lse) > _LOG_07).astype(jnp.float32)  # max fg softmax prob > 0.7
    card_pred = jnp.sum(is_obj, axis=1, keepdims=True)       # [B, 1, 1]
    tlen = jnp.sum(validf, axis=1, keepdims=True)            # [B, 1, 1]
    card_err = jnp.sum(jnp.abs(card_pred - tlen)) * (1.0 / b)  # F.l1_loss mean over batch

    # ---------------- box / size / offset / depth L1 (one shared diff) ------
    d = jnp.abs(gathered[:, :, C_PRED0:C_PRED1] -
                gathered[:, :, C_TGTF0:C_TGTF1]) * validf    # [B, M, 10]
    loss_bbox = jnp.sum(d[:, :, 0:4]) * inv_nb
    loss_size = jnp.sum(d[:, :, 4:7]) * inv_nb
    loss_offset = jnp.sum(d[:, :, 7:9]) * inv_nb
    loss_depth = jnp.sum(d[:, :, 9:10]) * inv_nb

    # ---------------- GIoU ---------------------------------------------------
    sbox = gathered[:, :, C_PRED0:C_PRED0 + 4]
    tbox = gathered[:, :, C_TGTF0:C_TGTF0 + 4]

    def to_xyxy(bx):
        cx, cy, w, h = bx[:, :, 0:1], bx[:, :, 1:2], bx[:, :, 2:3], bx[:, :, 3:4]
        return cx - 0.5 * w, cy - 0.5 * h, cx + 0.5 * w, cy + 0.5 * h

    sx0, sy0, sx1, sy1 = to_xyxy(sbox)
    tx0, ty0, tx1, ty1 = to_xyxy(tbox)
    area_s = (sx1 - sx0) * (sy1 - sy0)
    area_t = (tx1 - tx0) * (ty1 - ty0)
    inter = (jnp.maximum(jnp.minimum(sx1, tx1) - jnp.maximum(sx0, tx0), 0.0) *
             jnp.maximum(jnp.minimum(sy1, ty1) - jnp.maximum(sy0, ty0), 0.0))
    union = area_s + area_t - inter
    iou = inter / jnp.where(union > 0.0, union, 1.0)       # exact divide (8 elems)
    area_e = (jnp.maximum(jnp.maximum(sx1, tx1) - jnp.minimum(sx0, tx0), 0.0) *
              jnp.maximum(jnp.maximum(sy1, ty1) - jnp.minimum(sy0, ty0), 0.0))
    giou = iou - (area_e - union) / jnp.where(area_e > 0.0, area_e, 1.0)
    loss_giou = jnp.sum((1.0 - giou) * validf) * inv_nb

    # TODO(synk): loss_masks (nested tensors + bilinear interpolate + focal/dice)
    #             and loss_angle (python-dict category filtering) not implemented.

    # Lane-dense (1, 128) output row: 8 independent masked broadcasts, tree-summed.
    lane = lax.broadcasted_iota(jnp.int32, (1, 128), 1)
    vals = (loss_ce, class_error, card_err, loss_bbox, loss_giou,
            loss_size, loss_depth, loss_offset)
    terms = [jnp.where(lane == k, v, 0.0) for k, v in enumerate(vals)]
    while len(terms) > 1:
        terms = [terms[i] + terms[i + 1] for i in range(0, len(terms), 2)]
    out_ref[...] = terms[0]


def _run_criterion_kernel(slab):
    vspec = pl.BlockSpec(memory_space=pltpu.MemorySpace.VMEM)
    return pl.pallas_call(
        _criterion_kernel,
        out_shape=jax.ShapeDtypeStruct((1, 128), jnp.float32),
        in_specs=[vspec],
        out_specs=vspec,
    )(slab)


@jax.jit
def set_criterion_forward(pred_logits, pred_boxes, pred_size, pred_depth, pred_offset,
                          tgt_objects, tgt_counts, src_idx, tgt_idx):
    """Wrapper: packs everything into one [B, Q+M, 32] f32 slab (single input DMA).
    All gather/scatter, cross-entropy, cardinality, L1 and GIoU losses run inside
    one Pallas kernel.

    tgt_objects: [B, MMAX, 12] padded; columns: 0 label, 1:5 box(cxcywh),
                 5:8 size, 8:10 offset, 10 depth, 11 angle.
    src_idx/tgt_idx: [B, MMAX] matcher output (valid where j < tgt_counts[b]).
    """
    b, _, _ = pred_logits.shape
    m = tgt_objects.shape[1]
    f32 = jnp.float32

    pred = jnp.concatenate(
        [pred_logits, pred_boxes, pred_size, pred_offset, pred_depth],
        axis=-1).astype(f32)                                       # [B, Q, 15]
    pred = jnp.pad(pred, ((0, 0), (0, 0), (0, SLAB_COLS - pred.shape[-1])))

    meta = jnp.stack(
        [src_idx.astype(f32), tgt_idx.astype(f32),
         jnp.broadcast_to(tgt_counts.astype(f32)[:, None], (b, m))],
        axis=-1)                                                   # [B, M, 3]
    tgt = jnp.concatenate(
        [jnp.zeros((b, m, C_TGT0), f32), tgt_objects.astype(f32), meta,
         jnp.zeros((b, m, SLAB_COLS - C_TGT0 - 12 - 3), f32)],
        axis=-1)                                                   # [B, M, 32]

    slab = jnp.concatenate([pred, tgt], axis=1)                    # [B, Q+M, 32]

    # TODO(synk): when the 6 aux decoder layers are added, stack them on a leading
    # axis here and run ONE pallas_call over all layers (amortizes launch cost;
    # mark that axis 'parallel' via dimension_semantics for v7x's 2 TensorCores).
    out = _run_criterion_kernel(slab)

    names = ['loss_ce', 'class_error', 'cardinality_error', 'loss_bbox',
             'loss_giou', 'loss_size', 'loss_depth', 'loss_offset']
    return {name: out[0, k] for k, name in enumerate(names)}


if __name__ == "__main__":
    key = jax.random.PRNGKey(0)
    ks = jax.random.split(key, 8)

    # model outputs
    pred_logits = jax.random.normal(ks[0], (B, Q, L), jnp.float32)
    pred_boxes = jax.nn.sigmoid(jax.random.normal(ks[1], (B, Q, 4), jnp.float32))
    pred_size = jax.random.normal(ks[2], (B, Q, 3), jnp.float32) * 0.1 + 1.0
    pred_depth = jax.random.normal(ks[3], (B, Q, 1), jnp.float32) * 0.1 + 5.0
    pred_offset = jax.random.normal(ks[4], (B, Q, 2), jnp.float32) * 0.1

    # padded targets: [B, MMAX, 12] = [label, box(4), size(3), offset(2), depth, angle]
    tgt_counts = jnp.array([3, 2], jnp.int32)
    labels = jax.random.randint(ks[5], (B, MMAX), 0, NUM_CLASSES).astype(jnp.float32)
    boxes = jax.random.uniform(ks[6], (B, MMAX, 4), minval=0.2, maxval=0.6)
    rest = jax.random.normal(ks[7], (B, MMAX, 7), jnp.float32) * 0.1 + 1.0
    tgt_objects = jnp.concatenate([labels[..., None], boxes, rest], axis=-1)

    # TODO(synk): Hungarian matcher (scipy linear_sum_assignment) is an external
    # module passed to __init__; identity matching indices are used here instead.
    src_idx = jnp.broadcast_to(jnp.arange(MMAX, dtype=jnp.int32)[None, :], (B, MMAX))
    tgt_idx = src_idx

    # (empty_weight buffer is baked into the kernel as EOS_COEF; the
    #  empty_weight_plane buffer is unused by the implemented losses.)
    losses = set_criterion_forward(pred_logits, pred_boxes, pred_size, pred_depth,
                                   pred_offset, tgt_objects, tgt_counts,
                                   src_idx, tgt_idx)
    losses = jax.tree_util.tree_map(jax.block_until_ready, losses)

    ok = all(bool(jnp.isfinite(v)) for v in losses.values())
    if ok:
        print("KERNEL_OK")
    else:
        print("KERNEL_FAILED", losses)
</pallas_src>

<mosaic_0001>
module attributes {stable_mosaic.version = 11 : i64} {
  func.func @_criterion_kernel(%arg0: memref<2x12x32xf32, #tpu.memory_space<vmem>>, %arg1: memref<1x128xf32, #tpu.memory_space<vmem>>) attributes {dimension_semantics = [], scalar_prefetch = 0 : i64, scratch_operands = 0 : i64, tpu.core_type = #tpu.core_type<tc>} {
    %c0 = arith.constant 0 : index
    %c0_0 = arith.constant 0 : index
    %c0_1 = arith.constant 0 : index
    %0 = vector.load %arg0[%c0, %c0_0, %c0_1] : memref<2x12x32xf32, #tpu.memory_space<vmem>>, vector<2x12x32xf32>
    %1 = vector.extract_strided_slice %0 {offsets = [0, 8, 0], sizes = [2, 4, 32], strides = [1, 1, 1]} : vector<2x12x32xf32> to vector<2x4x32xf32>
    %2 = vector.extract_strided_slice %1 {offsets = [0, 0, 28], sizes = [2, 4, 1], strides = [1, 1, 1]} : vector<2x4x32xf32> to vector<2x4x1xf32>
    %3 = vector.extract_strided_slice %1 {offsets = [0, 0, 29], sizes = [2, 4, 1], strides = [1, 1, 1]} : vector<2x4x32xf32> to vector<2x4x1xf32>
    %4 = vector.extract_strided_slice %1 {offsets = [0, 0, 30], sizes = [2, 4, 1], strides = [1, 1, 1]} : vector<2x4x32xf32> to vector<2x4x1xf32>
    %5 = tpu.iota {dimensions = array<i32: 1>} : vector<2x4x1xi32>
    %6 = arith.sitofp %5 : vector<2x4x1xi32> to vector<2x4x1xf32>
    %7 = arith.cmpf olt, %6, %4 : vector<2x4x1xf32>
    %8 = arith.extui %7 : vector<2x4x1xi1> to vector<2x4x1xi32>
    %9 = arith.sitofp %8 : vector<2x4x1xi32> to vector<2x4x1xf32>
    %10 = vector.shape_cast %9 : vector<2x4x1xf32> to vector<1x2x4x1xf32>
    %cst = arith.constant dense<0.000000e+00> : vector<1xf32>
    %11 = vector.multi_reduction <add>, %10, %cst [1, 2, 3] : vector<1x2x4x1xf32> to vector<1xf32>
    %12 = vector.shape_cast %11 : vector<1xf32> to vector<1x1x1x1xf32>
    %13 = vector.extract %12[0, 0, 0, 0] : f32 from vector<1x1x1x1xf32>
    %cst_2 = arith.constant 1.000000e+00 : f32
    %14 = arith.maximumf %13, %cst_2 : f32
    %cst_3 = arith.constant 1.000000e+00 : f32
    %15 = arith.divf %cst_3, %14 : f32
    %16 = tpu.iota {dimensions = array<i32: 2>} : vector<2x4x12xi32>
    %17 = arith.sitofp %16 : vector<2x4x12xi32> to vector<2x4x12xf32>
    %18 = vector.broadcast %2 : vector<2x4x1xf32> to vector<2x4x12xf32>
    %19 = arith.subf %17, %18 : vector<2x4x12xf32>
    %20 = math.absf %19 : vector<2x4x12xf32>
    %cst_4 = arith.constant 5.000000e-01 : f32
    %21 = vector.broadcast %cst_4 : f32 to vector<2x4x12xf32>
    %22 = arith.cmpf olt, %20, %21 : vector<2x4x12xf32>
    %23 = arith.extui %22 : vector<2x4x12xi1> to vector<2x4x12xi32>
    %24 = arith.sitofp %23 : vector<2x4x12xi32> to vector<2x4x12xf32>
    %cst_5 = arith.constant 8.000000e+00 : f32
    %25 = vector.broadcast %cst_5 : f32 to vector<2x4x1xf32>
    %26 = arith.addf %25, %3 : vector<2x4x1xf32>
    %27 = vector.broadcast %26 : vector<2x4x1xf32> to vector<2x4x12xf32>
    %28 = arith.subf %17, %27 : vector<2x4x12xf32>
    %29 = math.absf %28 : vector<2x4x12xf32>
    %cst_6 = arith.constant 5.000000e-01 : f32
    %30 = vector.broadcast %cst_6 : f32 to vector<2x4x12xf32>
    %31 = arith.cmpf olt, %29, %30 : vector<2x4x12xf32>
    %32 = arith.extui %31 : vector<2x4x12xi1> to vector<2x4x12xi32>
    %33 = arith.sitofp %32 : vector<2x4x12xi32> to vector<2x4x12xf32>
    %34 = arith.addf %24, %33 : vector<2x4x12xf32>
    %35 = vector.broadcast %9 : vector<2x4x1xf32> to vector<2x4x12xf32>
    %36 = arith.mulf %34, %35 : vector<2x4x12xf32>
    "tpu.trace_start"() <{level = 10 : i32, message = "bjk,bkf->bjf"}> : () -> ()
    %cst_7 = arith.constant dense<0.000000e+00> : vector<2x4x32xf32>
    %37 = tpu.matmul %36, %0, %cst_7 {dimension_numbers = #tpu.dot_dimension_numbers<[2], [1], [1], [2], [0, 0, 0, 1, 1, 2], [0], [0]>} : vector<2x4x12xf32>, vector<2x12x32xf32>, vector<2x4x32xf32> -> vector<2x4x32xf32>
    "tpu.trace_stop"() : () -> ()
    %38 = vector.extract_strided_slice %37 {offsets = [0, 0, 0], sizes = [2, 4, 5], strides = [1, 1, 1]} : vector<2x4x32xf32> to vector<2x4x5xf32>
    %39 = vector.extract_strided_slice %37 {offsets = [0, 0, 16], sizes = [2, 4, 1], strides = [1, 1, 1]} : vector<2x4x32xf32> to vector<2x4x1xf32>
    %40 = vector.extract_strided_slice %0 {offsets = [0, 0, 0], sizes = [2, 8, 5], strides = [1, 1, 1]} : vector<2x12x32xf32> to vector<2x8x5xf32>
    %cst_8 = arith.constant dense<0xFF800000> : vector<2x8xf32>
    %41 = vector.multi_reduction <maximumf>, %40, %cst_8 [2] : vector<2x8x5xf32> to vector<2x8xf32>
    %42 = vector.shape_cast %41 : vector<2x8xf32> to vector<2x8x1xf32>
    %43 = vector.broadcast %42 : vector<2x8x1xf32> to vector<2x8x5xf32>
    %44 = arith.subf %40, %43 : vector<2x8x5xf32>
    %45 = math.exp %44 : vector<2x8x5xf32>
    %cst_9 = arith.constant dense<0.000000e+00> : vector<2x8xf32>
    %46 = vector.multi_reduction <add>, %45, %cst_9 [2] : vector<2x8x5xf32> to vector<2x8xf32>
    %47 = vector.shape_cast %46 : vector<2x8xf32> to vector<2x8x1xf32>
    %48 = math.log %47 : vector<2x8x1xf32>
    %49 = arith.addf %42, %48 : vector<2x8x1xf32>
    %50 = vector.extract_strided_slice %40 {offsets = [0, 0, 4], sizes = [2, 8, 1], strides = [1, 1, 1]} : vector<2x8x5xf32> to vector<2x8x1xf32>
    %51 = arith.subf %49, %50 : vector<2x8x1xf32>
    %cst_10 = arith.constant dense<0xFF800000> : vector<2x4xf32>
    %52 = vector.multi_reduction <maximumf>, %38, %cst_10 [2] : vector<2x4x5xf32> to vector<2x4xf32>
    %53 = vector.shape_cast %52 : vector<2x4xf32> to vector<2x4x1xf32>
    %54 = vector.broadcast %53 : vector<2x4x1xf32> to vector<2x4x5xf32>
    %55 = arith.subf %38, %54 : vector<2x4x5xf32>
    %56 = math.exp %55 : vector<2x4x5xf32>
    %cst_11 = arith.constant dense<0.000000e+00> : vector<2x4xf32>
    %57 = vector.multi_reduction <add>, %56, %cst_11 [2] : vector<2x4x5xf32> to vector<2x4xf32>
    %58 = vector.shape_cast %57 : vector<2x4xf32> to vector<2x4x1xf32>
    %59 = math.log %58 : vector<2x4x1xf32>
    %60 = arith.addf %53, %59 : vector<2x4x1xf32>
    %61 = tpu.iota {dimensions = array<i32: 2>} : vector<2x4x5xi32>
    %62 = arith.sitofp %61 : vector<2x4x5xi32> to vector<2x4x5xf32>
    %63 = vector.broadcast %39 : vector<2x4x1xf32> to vector<2x4x5xf32>
    %64 = arith.subf %62, %63 : vector<2x4x5xf32>
    %65 = math.absf %64 : vector<2x4x5xf32>
    %cst_12 = arith.constant 5.000000e-01 : f32
    %66 = vector.broadcast %cst_12 : f32 to vector<2x4x5xf32>
    %67 = arith.cmpf olt, %65, %66 : vector<2x4x5xf32>
    %68 = arith.extui %67 : vector<2x4x5xi1> to vector<2x4x5xi32>
    %69 = arith.sitofp %68 : vector<2x4x5xi32> to vector<2x4x5xf32>
    %70 = arith.mulf %38, %69 : vector<2x4x5xf32>
    %cst_13 = arith.constant dense<0.000000e+00> : vector<2x4xf32>
    %71 = vector.multi_reduction <add>, %70, %cst_13 [2] : vector<2x4x5xf32> to vector<2x4xf32>
    %72 = vector.shape_cast %71 : vector<2x4xf32> to vector<2x4x1xf32>
    %73 = vector.extract_strided_slice %38 {offsets = [0, 0, 4], sizes = [2, 4, 1], strides = [1, 1, 1]} : vector<2x4x5xf32> to vector<2x4x1xf32>
    %74 = arith.subf %60, %73 : vector<2x4x1xf32>
    %75 = arith.subf %60, %72 : vector<2x4x1xf32>
    %76 = arith.mulf %75, %9 : vector<2x4x1xf32>
    %77 = vector.shape_cast %76 : vector<2x4x1xf32> to vector<1x2x4x1xf32>
    %cst_14 = arith.constant dense<0.000000e+00> : vector<1xf32>
    %78 = vector.multi_reduction <add>, %77, %cst_14 [1, 2, 3] : vector<1x2x4x1xf32> to vector<1xf32>
    %79 = vector.shape_cast %78 : vector<1xf32> to vector<1x1x1x1xf32>
    %80 = vector.extract %79[0, 0, 0, 0] : f32 from vector<1x1x1x1xf32>
    %81 = vector.shape_cast %51 : vector<2x8x1xf32> to vector<1x2x8x1xf32>
    %cst_15 = arith.constant dense<0.000000e+00> : vector<1xf32>
    %82 = vector.multi_reduction <add>, %81, %cst_15 [1, 2, 3] : vector<1x2x8x1xf32> to vector<1xf32>
    %83 = vector.shape_cast %82 : vector<1xf32> to vector<1x1x1x1xf32>
    %84 = vector.extract %83[0, 0, 0, 0] : f32 from vector<1x1x1x1xf32>
    %85 = arith.mulf %74, %9 : vector<2x4x1xf32>
    %86 = vector.shape_cast %85 : vector<2x4x1xf32> to vector<1x2x4x1xf32>
    %cst_16 = arith.constant dense<0.000000e+00> : vector<1xf32>
    %87 = vector.multi_reduction <add>, %86, %cst_16 [1, 2, 3] : vector<1x2x4x1xf32> to vector<1xf32>
    %88 = vector.shape_cast %87 : vector<1xf32> to vector<1x1x1x1xf32>
    %89 = vector.extract %88[0, 0, 0, 0] : f32 from vector<1x1x1x1xf32>
    %90 = arith.subf %84, %89 : f32
    %cst_17 = arith.constant 1.000000e-01 : f32
    %91 = arith.mulf %cst_17, %90 : f32
    %cst_18 = arith.constant 1.600000e+01 : f32
    %92 = arith.subf %cst_18, %13 : f32
    %cst_19 = arith.constant 1.000000e-01 : f32
    %93 = arith.mulf %cst_19, %92 : f32
    %94 = arith.addf %13, %93 : f32
    %95 = arith.addf %80, %91 : f32
    %96 = arith.divf %95, %94 : f32
    %97 = arith.cmpf oge, %72, %53 : vector<2x4x1xf32>
    %98 = arith.extui %97 : vector<2x4x1xi1> to vector<2x4x1xi32>
    %99 = arith.sitofp %98 : vector<2x4x1xi32> to vector<2x4x1xf32>
    %100 = arith.mulf %99, %9 : vector<2x4x1xf32>
    %101 = vector.shape_cast %100 : vector<2x4x1xf32> to vector<1x2x4x1xf32>
    %cst_20 = arith.constant dense<0.000000e+00> : vector<1xf32>
    %102 = vector.multi_reduction <add>, %101, %cst_20 [1, 2, 3] : vector<1x2x4x1xf32> to vector<1xf32>
    %103 = vector.shape_cast %102 : vector<1xf32> to vector<1x1x1x1xf32>
    %104 = vector.extract %103[0, 0, 0, 0] : f32 from vector<1x1x1x1xf32>
    %cst_21 = arith.constant 1.000000e+02 : f32
    %105 = arith.mulf %cst_21, %104 : f32
    %106 = arith.mulf %105, %15 : f32
    %cst_22 = arith.constant 1.000000e+02 : f32
    %107 = arith.subf %cst_22, %106 : f32
    %108 = vector.extract_strided_slice %40 {offsets = [0, 0, 0], sizes = [2, 8, 4], strides = [1, 1, 1]} : vector<2x8x5xf32> to vector<2x8x4xf32>
    %cst_23 = arith.constant dense<0xFF800000> : vector<2x8xf32>
    %109 = vector.multi_reduction <maximumf>, %108, %cst_23 [2] : vector<2x8x4xf32> to vector<2x8xf32>
    %110 = vector.shape_cast %109 : vector<2x8xf32> to vector<2x8x1xf32>
    %111 = arith.subf %110, %49 : vector<2x8x1xf32>
    %cst_24 = arith.constant -0.356674939 : f32
    %112 = vector.broadcast %cst_24 : f32 to vector<2x8x1xf32>
    %113 = arith.cmpf ogt, %111, %112 : vector<2x8x1xf32>
    %114 = arith.extui %113 : vector<2x8x1xi1> to vector<2x8x1xi32>
    %115 = arith.sitofp %114 : vector<2x8x1xi32> to vector<2x8x1xf32>
    %cst_25 = arith.constant dense<0.000000e+00> : vector<2x1xf32>
    %116 = vector.multi_reduction <add>, %115, %cst_25 [1] : vector<2x8x1xf32> to vector<2x1xf32>
    %117 = vector.shape_cast %116 : vector<2x1xf32> to vector<2x1x1xf32>
    %cst_26 = arith.constant dense<0.000000e+00> : vector<2x1xf32>
    %118 = vector.multi_reduction <add>, %9, %cst_26 [1] : vector<2x4x1xf32> to vector<2x1xf32>
    %119 = vector.shape_cast %118 : vector<2x1xf32> to vector<2x1x1xf32>
    %120 = arith.subf %117, %119 : vector<2x1x1xf32>
    %121 = math.absf %120 : vector<2x1x1xf32>
    %122 = vector.shape_cast %121 : vector<2x1x1xf32> to vector<1x2x1x1xf32>
    %cst_27 = arith.constant dense<0.000000e+00> : vector<1xf32>
    %123 = vector.multi_reduction <add>, %122, %cst_27 [1, 2, 3] : vector<1x2x1x1xf32> to vector<1xf32>
    %124 = vector.shape_cast %123 : vector<1xf32> to vector<1x1x1x1xf32>
    %125 = vector.extract %124[0, 0, 0, 0] : f32 from vector<1x1x1x1xf32>
    %cst_28 = arith.constant 5.000000e-01 : f32
    %126 = arith.mulf %125, %cst_28 : f32
    %127 = vector.extract_strided_slice %37 {offsets = [0, 0, 5], sizes = [2, 4, 10], strides = [1, 1, 1]} : vector<2x4x32xf32> to vector<2x4x10xf32>
    %128 = vector.extract_strided_slice %37 {offsets = [0, 0, 17], sizes = [2, 4, 10], strides = [1, 1, 1]} : vector<2x4x32xf32> to vector<2x4x10xf32>
    %129 = arith.subf %127, %128 : vector<2x4x10xf32>
    %130 = math.absf %129 : vector<2x4x10xf32>
    %131 = vector.broadcast %9 : vector<2x4x1xf32> to vector<2x4x10xf32>
    %132 = arith.mulf %130, %131 : vector<2x4x10xf32>
    %133 = vector.extract_strided_slice %132 {offsets = [0, 0, 0], sizes = [2, 4, 4], strides = [1, 1, 1]} : vector<2x4x10xf32> to vector<2x4x4xf32>
    %134 = vector.shape_cast %133 : vector<2x4x4xf32> to vector<1x2x4x4xf32>
    %cst_29 = arith.constant dense<0.000000e+00> : vector<1xf32>
    %135 = vector.multi_reduction <add>, %134, %cst_29 [1, 2, 3] : vector<1x2x4x4xf32> to vector<1xf32>
    %136 = vector.shape_cast %135 : vector<1xf32> to vector<1x1x1x1xf32>
    %137 = vector.extract %136[0, 0, 0, 0] : f32 from vector<1x1x1x1xf32>
    %138 = arith.mulf %137, %15 : f32
    %139 = vector.extract_strided_slice %132 {offsets = [0, 0, 4], sizes = [2, 4, 3], strides = [1, 1, 1]} : vector<2x4x10xf32> to vector<2x4x3xf32>
    %140 = vector.shape_cast %139 : vector<2x4x3xf32> to vector<1x2x4x3xf32>
    %cst_30 = arith.constant dense<0.000000e+00> : vector<1xf32>
    %141 = vector.multi_reduction <add>, %140, %cst_30 [1, 2, 3] : vector<1x2x4x3xf32> to vector<1xf32>
    %142 = vector.shape_cast %141 : vector<1xf32> to vector<1x1x1x1xf32>
    %143 = vector.extract %142[0, 0, 0, 0] : f32 from vector<1x1x1x1xf32>
    %144 = arith.mulf %143, %15 : f32
    %145 = vector.extract_strided_slice %132 {offsets = [0, 0, 7], sizes = [2, 4, 2], strides = [1, 1, 1]} : vector<2x4x10xf32> to vector<2x4x2xf32>
    %146 = vector.shape_cast %145 : vector<2x4x2xf32> to vector<1x2x4x2xf32>
    %cst_31 = arith.constant dense<0.000000e+00> : vector<1xf32>
    %147 = vector.multi_reduction <add>, %146, %cst_31 [1, 2, 3] : vector<1x2x4x2xf32> to vector<1xf32>
    %148 = vector.shape_cast %147 : vector<1xf32> to vector<1x1x1x1xf32>
    %149 = vector.extract %148[0, 0, 0, 0] : f32 from vector<1x1x1x1xf32>
    %150 = arith.mulf %149, %15 : f32
    %151 = vector.extract_strided_slice %132 {offsets = [0, 0, 9], sizes = [2, 4, 1], strides = [1, 1, 1]} : vector<2x4x10xf32> to vector<2x4x1xf32>
    %152 = vector.shape_cast %151 : vector<2x4x1xf32> to vector<1x2x4x1xf32>
    %cst_32 = arith.constant dense<0.000000e+00> : vector<1xf32>
    %153 = vector.multi_reduction <add>, %152, %cst_32 [1, 2, 3] : vector<1x2x4x1xf32> to vector<1xf32>
    %154 = vector.shape_cast %153 : vector<1xf32> to vector<1x1x1x1xf32>
    %155 = vector.extract %154[0, 0, 0, 0] : f32 from vector<1x1x1x1xf32>
    %156 = arith.mulf %155, %15 : f32
    %157 = vector.extract_strided_slice %37 {offsets = [0, 0, 5], sizes = [2, 4, 4], strides = [1, 1, 1]} : vector<2x4x32xf32> to vector<2x4x4xf32>
    %158 = vector.extract_strided_slice %37 {offsets = [0, 0, 17], sizes = [2, 4, 4], strides = [1, 1, 1]} : vector<2x4x32xf32> to vector<2x4x4xf32>
    %159 = vector.extract_strided_slice %157 {offsets = [0, 0, 0], sizes = [2, 4, 1], strides = [1, 1, 1]} : vector<2x4x4xf32> to vector<2x4x1xf32>
    %160 = vector.extract_strided_slice %157 {offsets = [0, 0, 1], sizes = [2, 4, 1], strides = [1, 1, 1]} : vector<2x4x4xf32> to vector<2x4x1xf32>
    %161 = vector.extract_strided_slice %157 {offsets = [0, 0, 2], sizes = [2, 4, 1], strides = [1, 1, 1]} : vector<2x4x4xf32> to vector<2x4x1xf32>
    %162 = vector.extract_strided_slice %157 {offsets = [0, 0, 3], sizes = [2, 4, 1], strides = [1, 1, 1]} : vector<2x4x4xf32> to vector<2x4x1xf32>
    %cst_33 = arith.constant 5.000000e-01 : f32
    %163 = vector.broadcast %cst_33 : f32 to vector<2x4x1xf32>
    %164 = arith.mulf %163, %161 : vector<2x4x1xf32>
    %165 = arith.subf %159, %164 : vector<2x4x1xf32>
    %cst_34 = arith.constant 5.000000e-01 : f32
    %166 = vector.broadcast %cst_34 : f32 to vector<2x4x1xf32>
    %167 = arith.mulf %166, %162 : vector<2x4x1xf32>
    %168 = arith.subf %160, %167 : vector<2x4x1xf32>
    %cst_35 = arith.constant 5.000000e-01 : f32
    %169 = vector.broadcast %cst_35 : f32 to vector<2x4x1xf32>
    %170 = arith.mulf %169, %161 : vector<2x4x1xf32>
    %171 = arith.addf %159, %170 : vector<2x4x1xf32>
    %cst_36 = arith.constant 5.000000e-01 : f32
    %172 = vector.broadcast %cst_36 : f32 to vector<2x4x1xf32>
    %173 = arith.mulf %172, %162 : vector<2x4x1xf32>
    %174 = arith.addf %160, %173 : vector<2x4x1xf32>
    %175 = vector.extract_strided_slice %158 {offsets = [0, 0, 0], sizes = [2, 4, 1], strides = [1, 1, 1]} : vector<2x4x4xf32> to vector<2x4x1xf32>
    %176 = vector.extract_strided_slice %158 {offsets = [0, 0, 1], sizes = [2, 4, 1], strides = [1, 1, 1]} : vector<2x4x4xf32> to vector<2x4x1xf32>
    %177 = vector.extract_strided_slice %158 {offsets = [0, 0, 2], sizes = [2, 4, 1], strides = [1, 1, 1]} : vector<2x4x4xf32> to vector<2x4x1xf32>
    %178 = vector.extract_strided_slice %158 {offsets = [0, 0, 3], sizes = [2, 4, 1], strides = [1, 1, 1]} : vector<2x4x4xf32> to vector<2x4x1xf32>
    %cst_37 = arith.constant 5.000000e-01 : f32
    %179 = vector.broadcast %cst_37 : f32 to vector<2x4x1xf32>
    %180 = arith.mulf %179, %177 : vector<2x4x1xf32>
    %181 = arith.subf %175, %180 : vector<2x4x1xf32>
    %cst_38 = arith.constant 5.000000e-01 : f32
    %182 = vector.broadcast %cst_38 : f32 to vector<2x4x1xf32>
    %183 = arith.mulf %182, %178 : vector<2x4x1xf32>
    %184 = arith.subf %176, %183 : vector<2x4x1xf32>
    %cst_39 = arith.constant 5.000000e-01 : f32
    %185 = vector.broadcast %cst_39 : f32 to vector<2x4x1xf32>
    %186 = arith.mulf %185, %177 : vector<2x4x1xf32>
    %187 = arith.addf %175, %186 : vector<2x4x1xf32>
    %cst_40 = arith.constant 5.000000e-01 : f32
    %188 = vector.broadcast %cst_40 : f32 to vector<2x4x1xf32>
    %189 = arith.mulf %188, %178 : vector<2x4x1xf32>
    %190 = arith.addf %176, %189 : vector<2x4x1xf32>
    %191 = arith.subf %171, %165 : vector<2x4x1xf32>
    %192 = arith.subf %174, %168 : vector<2x4x1xf32>
    %193 = arith.mulf %191, %192 : vector<2x4x1xf32>
    %194 = arith.subf %187, %181 : vector<2x4x1xf32>
    %195 = arith.subf %190, %184 : vector<2x4x1xf32>
    %196 = arith.mulf %194, %195 : vector<2x4x1xf32>
    %197 = arith.minimumf %171, %187 : vector<2x4x1xf32>
    %198 = arith.maximumf %165, %181 : vector<2x4x1xf32>
    %199 = arith.subf %197, %198 : vector<2x4x1xf32>
    %cst_41 = arith.constant 0.000000e+00 : f32
    %200 = vector.broadcast %cst_41 : f32 to vector<2x4x1xf32>
    %201 = arith.maximumf %199, %200 : vector<2x4x1xf32>
    %202 = arith.minimumf %174, %190 : vector<2x4x1xf32>
    %203 = arith.maximumf %168, %184 : vector<2x4x1xf32>
    %204 = arith.subf %202, %203 : vector<2x4x1xf32>
    %cst_42 = arith.constant 0.000000e+00 : f32
    %205 = vector.broadcast %cst_42 : f32 to vector<2x4x1xf32>
    %206 = arith.maximumf %204, %205 : vector<2x4x1xf32>
    %207 = arith.mulf %201, %206 : vector<2x4x1xf32>
    %208 = arith.addf %193, %196 : vector<2x4x1xf32>
    %209 = arith.subf %208, %207 : vector<2x4x1xf32>
    %cst_43 = arith.constant 0.000000e+00 : f32
    %210 = vector.broadcast %cst_43 : f32 to vector<2x4x1xf32>
    %211 = arith.cmpf ogt, %209, %210 : vector<2x4x1xf32>
    %cst_44 = arith.constant 1.000000e+00 : f32
    %212 = vector.broadcast %cst_44 : f32 to vector<2x4x1xf32>
    %213 = arith.select %211, %209, %212 : vector<2x4x1xi1>, vector<2x4x1xf32>
    %214 = arith.divf %207, %213 : vector<2x4x1xf32>
    %215 = arith.maximumf %171, %187 : vector<2x4x1xf32>
    %216 = arith.minimumf %165, %181 : vector<2x4x1xf32>
    %217 = arith.subf %215, %216 : vector<2x4x1xf32>
    %cst_45 = arith.constant 0.000000e+00 : f32
    %218 = vector.broadcast %cst_45 : f32 to vector<2x4x1xf32>
    %219 = arith.maximumf %217, %218 : vector<2x4x1xf32>
    %220 = arith.maximumf %174, %190 : vector<2x4x1xf32>
    %221 = arith.minimumf %168, %184 : vector<2x4x1xf32>
    %222 = arith.subf %220, %221 : vector<2x4x1xf32>
    %cst_46 = arith.constant 0.000000e+00 : f32
    %223 = vector.broadcast %cst_46 : f32 to vector<2x4x1xf32>
    %224 = arith.maximumf %222, %223 : vector<2x4x1xf32>
    %225 = arith.mulf %219, %224 : vector<2x4x1xf32>
    %226 = arith.subf %225, %209 : vector<2x4x1xf32>
    %cst_47 = arith.constant 0.000000e+00 : f32
    %227 = vector.broadcast %cst_47 : f32 to vector<2x4x1xf32>
    %228 = arith.cmpf ogt, %225, %227 : vector<2x4x1xf32>
    %cst_48 = arith.constant 1.000000e+00 : f32
    %229 = vector.broadcast %cst_48 : f32 to vector<2x4x1xf32>
    %230 = arith.select %228, %225, %229 : vector<2x4x1xi1>, vector<2x4x1xf32>
    %231 = arith.divf %226, %230 : vector<2x4x1xf32>
    %232 = arith.subf %214, %231 : vector<2x4x1xf32>
    %cst_49 = arith.constant 1.000000e+00 : f32
    %233 = vector.broadcast %cst_49 : f32 to vector<2x4x1xf32>
    %234 = arith.subf %233, %232 : vector<2x4x1xf32>
    %235 = arith.mulf %234, %9 : vector<2x4x1xf32>
    %236 = vector.shape_cast %235 : vector<2x4x1xf32> to vector<1x2x4x1xf32>
    %cst_50 = arith.constant dense<0.000000e+00> : vector<1xf32>
    %237 = vector.multi_reduction <add>, %236, %cst_50 [1, 2, 3] : vector<1x2x4x1xf32> to vector<1xf32>
    %238 = vector.shape_cast %237 : vector<1xf32> to vector<1x1x1x1xf32>
    %239 = vector.extract %238[0, 0, 0, 0] : f32 from vector<1x1x1x1xf32>
    %240 = arith.mulf %239, %15 : f32
    %241 = tpu.iota {dimensions = array<i32: 1>} : vector<1x128xi32>
    %c0_i32 = arith.constant 0 : i32
    %242 = vector.broadcast %c0_i32 : i32 to vector<1x128xi32>
    %243 = arith.cmpi eq, %241, %242 : vector<1x128xi32>
    %cst_51 = arith.constant 0.000000e+00 : f32
    %244 = vector.broadcast %96 : f32 to vector<1x128xf32>
    %245 = vector.broadcast %cst_51 : f32 to vector<1x128xf32>
    %246 = arith.select %243, %244, %245 : vector<1x128xi1>, vector<1x128xf32>
    %c1_i32 = arith.constant 1 : i32
    %247 = vector.broadcast %c1_i32 : i32 to vector<1x128xi32>
    %248 = arith.cmpi eq, %241, %247 : vector<1x128xi32>
    %cst_52 = arith.constant 0.000000e+00 : f32
    %249 = vector.broadcast %107 : f32 to vector<1x128xf32>
    %250 = vector.broadcast %cst_52 : f32 to vector<1x128xf32>
    %251 = arith.select %248, %249, %250 : vector<1x128xi1>, vector<1x128xf32>
    %c2_i32 = arith.constant 2 : i32
    %252 = vector.broadcast %c2_i32 : i32 to vector<1x128xi32>
    %253 = arith.cmpi eq, %241, %252 : vector<1x128xi32>
    %cst_53 = arith.constant 0.000000e+00 : f32
    %254 = vector.broadcast %126 : f32 to vector<1x128xf32>
    %255 = vector.broadcast %cst_53 : f32 to vector<1x128xf32>
    %256 = arith.select %253, %254, %255 : vector<1x128xi1>, vector<1x128xf32>
    %c3_i32 = arith.constant 3 : i32
    %257 = vector.broadcast %c3_i32 : i32 to vector<1x128xi32>
    %258 = arith.cmpi eq, %241, %257 : vector<1x128xi32>
    %cst_54 = arith.constant 0.000000e+00 : f32
    %259 = vector.broadcast %138 : f32 to vector<1x128xf32>
    %260 = vector.broadcast %cst_54 : f32 to vector<1x128xf32>
    %261 = arith.select %258, %259, %260 : vector<1x128xi1>, vector<1x128xf32>
    %c4_i32 = arith.constant 4 : i32
    %262 = vector.broadcast %c4_i32 : i32 to vector<1x128xi32>
    %263 = arith.cmpi eq, %241, %262 : vector<1x128xi32>
    %cst_55 = arith.constant 0.000000e+00 : f32
    %264 = vector.broadcast %240 : f32 to vector<1x128xf32>
    %265 = vector.broadcast %cst_55 : f32 to vector<1x128xf32>
    %266 = arith.select %263, %264, %265 : vector<1x128xi1>, vector<1x128xf32>
    %c5_i32 = arith.constant 5 : i32
    %267 = vector.broadcast %c5_i32 : i32 to vector<1x128xi32>
    %268 = arith.cmpi eq, %241, %267 : vector<1x128xi32>
    %cst_56 = arith.constant 0.000000e+00 : f32
    %269 = vector.broadcast %144 : f32 to vector<1x128xf32>
    %270 = vector.broadcast %cst_56 : f32 to vector<1x128xf32>
    %271 = arith.select %268, %269, %270 : vector<1x128xi1>, vector<1x128xf32>
    %c6_i32 = arith.constant 6 : i32
    %272 = vector.broadcast %c6_i32 : i32 to vector<1x128xi32>
    %273 = arith.cmpi eq, %241, %272 : vector<1x128xi32>
    %cst_57 = arith.constant 0.000000e+00 : f32
    %274 = vector.broadcast %156 : f32 to vector<1x128xf32>
    %275 = vector.broadcast %cst_57 : f32 to vector<1x128xf32>
    %276 = arith.select %273, %274, %275 : vector<1x128xi1>, vector<1x128xf32>
    %c7_i32 = arith.constant 7 : i32
    %277 = vector.broadcast %c7_i32 : i32 to vector<1x128xi32>
    %278 = arith.cmpi eq, %241, %277 : vector<1x128xi32>
    %cst_58 = arith.constant 0.000000e+00 : f32
    %279 = vector.broadcast %150 : f32 to vector<1x128xf32>
    %280 = vector.broadcast %cst_58 : f32 to vector<1x128xf32>
    %281 = arith.select %278, %279, %280 : vector<1x128xi1>, vector<1x128xf32>
    %282 = arith.addf %246, %251 : vector<1x128xf32>
    %283 = arith.addf %256, %261 : vector<1x128xf32>
    %284 = arith.addf %266, %271 : vector<1x128xf32>
    %285 = arith.addf %276, %281 : vector<1x128xf32>
    %286 = arith.addf %282, %283 : vector<1x128xf32>
    %287 = arith.addf %284, %285 : vector<1x128xf32>
    %288 = arith.addf %286, %287 : vector<1x128xf32>
    %c0_59 = arith.constant 0 : index
    %c0_60 = arith.constant 0 : index
    %289 = vector.load %arg1[%c0_59, %c0_60] : memref<1x128xf32, #tpu.memory_space<vmem>>, vector<1x128xf32>
    tpu.vector_store %arg1[%c0_59, %c0_60], %288 {strides = array<i32>} : memref<1x128xf32, #tpu.memory_space<vmem>>, vector<1x128xf32>,
    return
  }
}

</mosaic_0001>

<bundles_post_ra>
// kernel: set_criterion_forward.1
= control target key start
LH: loop header
LB: loop body
LE: loop exit
PB: predicated region body
PF: predicated region fallthrough
CT: control target
= control target key end

     0   :  { %v12_v0 = vlaneseq  ;;  %v931_v1 = vmov 28   ;;  %v932_v3 = vmov 29   ;;  %v933_v9 = vmov 0.0   ;;  %s937_s14 = smov 98   ;;  %s941_s16 = smov 1.0   ;;  %s1248_s0 = inlined_call_operand.vmem [shape: f32[2,12,32], index: 0, kind: input, shape index: {}]   ;;  %s1249_s1 = inlined_call_operand.vmem [shape: f32[1,128], index: 1, kind: output, shape index: {}]  }
   0x1   :  { %878 = vset.pattern.permute.xlu0 %v931_v1  ;;  %v9_v2 = vld [vmem:[%s1248_s0 + $0x8] sm:$0xf]  ;;  %879 = vset.pattern.permute.xlu1 %v932_v3  ;;  %v11_v4 = vld [vmem:[%s1248_s0 + $0x18] sm:$0xf]  ;;  %v979_v13 = vld [vmem:[%s1248_s0] sm:$0xff]  ;;  %v934_v14 = vmov 30  }
   0x2   :  { %v13_v5 = vshrl.u32 %v12_v0, 7  ;;  %51 = vperm.xlu0 %878, %v9_v2   ;;  %v69_v6 = vadd.f32 8.0, %v9_v2  ;;  %v70_v8 = vadd.f32 8.0, %v11_v4  ;;  %vm107_vm2 = vcmask 1043456   ;;  %v986_v17 = vld [vmem:[%s1248_s0 + $0x10] sm:$0xff]  ;;  %s940_s0 = smov 126  }
   0x3   :  { %v826_v15 = vpack.c.bf16 %v9_v2, %v979_v13  ;;  %v935_v16 = vmov 0.0|0.0   ;;  %vm936_vm3 = vmmov 1   ;;  %v830_v18 = vpack.c.bf16 %v11_v4, %v986_v17  ;;  %s942_s18 = smov 124   ;;  %s943_s19 = smov 116  }
   0x4   :  { %v14_v7 = vcvt.s32.f32 %v13_v5  ;;  %73 = vperm.xlu1 %879, %v69_v6   ;;  %825 = vmatprep.subr.bf16.mxu0 %v935_v16  ;;  %vm827_vm4 = vmpackc.low %vm107_vm2, %vm936_vm3  ;;  %vm938_vm5 = vmmov 0   ;;  %vm255_vm6 = vcmask 39936   ;;  %v997_v21 = vand.u32 127, %v12_v0  ;;  %s944_s20 = smov 127   ;;  %s945_s21 = smov 102  }
   0x5   :  { %828 = vmatpush3.bf16.msk.msra.mxu0 %vm827_vm4, %v826_v15  ;;  %829 = vmatprep.subr.bf16.mxu1 %v935_v16  ;;  %v256_v19 = vsel %vm255_vm6, %v979_v13, -inf  ;;  %v259_v20 = vsel %vm255_vm6, %v986_v17, -inf  ;;  %vm29_vm10 = vcmask 3072   ;;  %vm103_vm12 = vcmask 97280   ;;  %s946_s22 = smov 103   ;;  %s947_s23 = smov 123  }
   0x6   :  { %vm15_vm0 = vcmp.lt.f32.partialorder %v14_v7, %v9_v2  ;;  %vm16_vm1 = vcmp.lt.f32.partialorder %v14_v7, %v11_v4  ;;  %56 = vperm.xlu0 %878, %v11_v4   ;;  %815 = vmatprep.mubr.msk.f32.mxu0 %vm938_vm5, %v933_v9  ;;  %v1000_v22 = vcvt.s32.f32 %v997_v21  ;;  %v939_v62 = vmov 16   ;;  %s948_s24 = smov 119   ;;  %s949_s25 = smov 114  }
   0x7   :  { %v967_v10 = vsel %vm15_vm0, 1.0, %v933_v9  ;;  %v970_v11 = vsel %vm16_vm1, 1.0, %v933_v9  ;;  %822 = vmatprep.mubr.msk.f32.mxu1 %vm938_vm5, %v933_v9  ;;  %832 = vmatpush3.bf16.msk.msra.mxu1 %vm827_vm4, %v830_v18  ;;  %vm282_vm13 = vcmask 35840   ;;  %vm369_vm14 = vcmask 7168  }
   0x8   :  { %78 = vperm.xlu1 %879, %v70_v8   ;;  %v974_v12 = vpack.i.bf16 %v970_v11, %v967_v10  ;;  %vm451_vm0 = vcmask 31744   ;;  %vm478_vm2 = vcmask 249072  }
   0xa   :  { %880 = vset.pattern.permute.xlu0 %v934_v14 }
   0xb   :  { %882 = vperm.xlu0 %880, %v974_v12  }
   0xc   :  { %887 = vrot.lane.b32.xlu1 %v974_v12, %s937_s14 }
   0xd   :  { %891 = vset.pattern.permute.xlu1 %v939_v62 }
   0xf   :  { %902 = vset.pattern.permute.xlu0 %v939_v62 }
  0x2a   :  { %257 = vmax.xlane.f32.xlu0 %v256_v19 }
  0x2e   :  { %260 = vmax.xlane.f32.xlu0 %v259_v20 }
  0x81   :  { %v52_v23 = vpop.permute.xlu0 %51 }
  0x82   :  { %v59_v24 = vsub.f32 %v1000_v22, %v52_v23 }
  0x83   :  { %v74_v25 = vpop.permute.xlu1 %73 }
  0x84   :  { %v61_v26 = vand.u32 2147483647, %v59_v24  ;;  %v81_v27 = vsub.f32 %v1000_v22, %v74_v25 }
  0x85   :  { %v57_v28 = vpop.permute.xlu0 %56 }
  0x86   :  { %vm63_vm7 = vcmp.lt.f32.partialorder %v61_v26, 0.5  ;;  %v83_v29 = vand.u32 2147483647, %v81_v27  ;;  %v60_v30 = vsub.f32 %v1000_v22, %v57_v28 }
  0x87   :  { %v79_v31 = vpop.permute.xlu1 %78  ;;  %v791_v34 = vsel %vm63_vm7, 1.0, %v933_v9 }
  0x88   :  { %vm85_vm8 = vcmp.lt.f32.partialorder %v83_v29, 0.5  ;;  %v62_v32 = vand.u32 2147483647, %v60_v30  ;;  %v82_v33 = vsub.f32 %v1000_v22, %v79_v31 }
  0x89   :  { %v793_v35 = vsel %vm85_vm8, 1.0, %v933_v9 }
  0x8a   :  { %v91_v36 = vadd.f32 %v793_v35, %v791_v34  ;;  %vm64_vm9 = vcmp.lt.f32.partialorder %v62_v32, 0.5  ;;  %v84_v37 = vand.u32 2147483647, %v82_v33  ;;  %v1008_v38 = vpop.permute.xlu0 %882 }
  0x8b   :  { %v884_v39 = vunpack.i.l.bf16 %v1008_v38  ;;  %v888_v40 = vpop.permute.xlu1 %887  ;;  %v792_v43 = vsel %vm64_vm9, 1.0, %v933_v9  ;;  %v885_v47 = vunpack.i.h.bf16 %v1008_v38 }
  0x8c   :  { %vm86_vm11 = vcmp.lt.f32.partialorder %v84_v37, 0.5  ;;  %v890_v41 = vunpack.i.h.bf16 %v888_v40  ;;  %v889_v42 = vunpack.i.l.bf16 %v888_v40 }
  0x8d   :  { %v794_v44 = vsel %vm86_vm11, 1.0, %v933_v9  ;;  %v101_v45 = vmul.f32 %v884_v39, %v91_v36 }
  0x8e   :  { %v92_v46 = vadd.f32 %v794_v44, %v792_v43  ;;  %v30_v48 = vsel %vm29_vm10, %v889_v42, 0.0  ;;  %v31_v49 = vsel %vm29_vm10, %v890_v41, 0.0 }
  0x8f   :  { %816 = vmatmul.mubr.msk.f32.vlgmr.msra.gmra.mrb[0].mxu0 %vm103_vm12, %v101_v45  ;;  %v32_v50 = vadd.f32 %v31_v49, %v30_v48 }
  0x90   :  { %v102_v51 = vmul.f32 %v885_v47, %v92_v46 }
  0x91   :  { %33 = vadd.xlane.f32.xlu1 %v32_v50 }
  0x92   :  { %823 = vmatmul.mubr.msk.f32.vlgmr.msra.gmra.mrb[0].mxu1 %vm103_vm12, %v102_v51  ;;  %vm505_vm12 = vcmask 0  }
  0xb7   :  { %v258_v52 = vpop.xlane.xlu0 %257 }
  0xb8   :  { %v262_v53 = vsub.f32 %v979_v13, %v258_v52 }
  0xba   :  { %v264_v54 = vmul.f32 1.442695, %v262_v53 }
  0xbb   :  { %v261_v55 = vpop.xlane.xlu0 %260 }
  0xbc   :  { %903 = vpow2.f32 %v264_v54  ;;  %v263_v56 = vsub.f32 %v986_v17, %v261_v55 }
  0xbe   :  { %v266_v57 = vmul.f32 1.442695, %v263_v56 }
  0xc0   :  { %905 = vpow2.f32 %v266_v57 }
  0xc6   :  { %v904_v58 = vpop.eup %903 }
  0xc7   :  { %v268_v59 = vsel %vm255_vm6, %v904_v58, 0.0 }
  0xc8   :  { %269 = vadd.xlane.f32.xlu1 %v268_v59  ;;  %v452_v59 = vsel %vm451_vm0, %v979_v13, -inf }
  0xca   :  { %v906_v60 = vpop.eup %905 }
  0xcb   :  { %v271_v61 = vsel %vm255_vm6, %v906_v60, 0.0 }
  0xcc   :  { %272 = vadd.xlane.f32.xlu0 %v271_v61 }
 0x11e   :  { %v34_v63 = vpop.xlane.xlu1 %33 }
 0x11f   :  { %v35_v0 = vrot.slane %v34_v63, 4 }
 0x121   :  { %v36_v1 = vadd.f32 %v35_v0, %v34_v63 }
 0x123   :  { %v37_v2 = vrot.slane %v36_v1, 2 }
 0x125   :  { %v38_v3 = vadd.f32 %v37_v2, %v36_v1 }
 0x127   :  { %v39_v4 = vrot.slane %v38_v3, 1 }
 0x129   :  { %v40_v5 = vadd.f32 %v39_v4, %v38_v3  ;;  %v455_v4 = vsel %vm451_vm0, %v986_v17, -inf  ;;  %vm756_vm0 = vcmp.eq.s32.totalorder %v997_v21, 1 }
 0x12b   :  { %833 = vpush %v40_v5 }
 0x155   :  { %v270_v18 = vpop.xlane.xlu1 %269 }
 0x156   :  { %907 = vlog2.f32 %v270_v18 }
 0x159   :  { %v273_v19 = vpop.xlane.xlu0 %272 }
 0x15a   :  { %909 = vlog2.f32 %v273_v19 }
 0x15c   :  { %s1034_s15 = spop %833 }
 0x15d   :  { %s42_s17 = smax.f32 %s941_s16, %s1034_s15  ;;  %s412_s26 = ssub.f32 16.0, %s1034_s15 }
 0x15e   :  { %v43_v29 = vstv %s42_s17 }
 0x15f   :  { %911 = vrcp.f32 %v43_v29  ;;  %s413_s27 = smul.f32 0.1, %s412_s26 }
 0x160   :  { %v908_v23 = vpop.eup %907 }
 0x161   :  { %v275_v24 = vmul.f32 0.6931472, %v908_v23  ;;  %s414_s28 = sadd.f32 %s1034_s15, %s413_s27 }
 0x162   :  { %v1024_v6 = vpop.f32.mrb[0].mxu0 }
 0x163   :  { %v817_v7 = vpop.f32.mrb[1].mxu0  ;;  %v283_v8 = vsel %vm282_vm13, %v1024_v6, -inf  ;;  %v612_v20 = vmul.f32 0.5, %v1024_v6  ;;  %v1037_v26 = vadd.f32 %v275_v24, %v258_v52 }
 0x164   :  { %284 = vmax.xlane.f32.xlu1 %v283_v8  ;;  %v910_v25 = vpop.eup %909 }
 0x165   :  { %v1028_v14 = vpop.f32.mrb[0].mxu1  ;;  %v277_v27 = vmul.f32 0.6931472, %v910_v25  ;;  %v280_v31 = vsub.f32 %v1037_v26, %v979_v13 }
 0x166   :  { %v824_v15 = vpop.f32.mrb[1].mxu1  ;;  %v286_v16 = vsel %vm282_vm13, %v1028_v14, -inf  ;;  %v613_v28 = vmul.f32 0.5, %v1028_v14 }
 0x167   :  { %287 = vmax.xlane.f32.xlu0 %v286_v16  ;;  %v1041_v30 = vadd.f32 %v277_v27, %v261_v55 }
 0x169   :  { %v281_v32 = vsub.f32 %v1041_v30, %v986_v17  ;;  %v912_v33 = vpop.eup %911 }
 0x16a   :  { %835 = vpush %v912_v33 }
 0x175   :  { %616 = vrot.lane.b32.xlu1 %v612_v20, %s940_s0 }
 0x179   :  { %309 = vperm.xlu1 %891, %v1024_v6  }
 0x17d   :  { %618 = vrot.lane.b32.xlu0 %v613_v28, %s940_s0  ;;  %314 = vperm.xlu1 %891, %v1028_v14  }
 0x181   :  { %363 = vrot.lane.b32.xlu1 %v280_v31, %s942_s18 }
 0x185   :  { %365 = vrot.lane.b32.xlu1 %v281_v32, %s942_s18 }
 0x19b   :  { %s1227_s29 = spop %835 }
 0x1f1   :  { %v1049_v34 = vpop.xlane.xlu1 %284 }
 0x1f2   :  { %v289_v13 = vsub.f32 %v1024_v6, %v1049_v34 }
 0x1f4   :  { %v1051_v35 = vpop.xlane.xlu0 %287  ;;  %v291_v2 = vmul.f32 1.442695, %v289_v13 }
 0x1f5   :  { %v617_v36 = vpop.permute.xlu1 %616  ;;  %v290_v46 = vsub.f32 %v1028_v14, %v1051_v35 }
 0x1f6   :  { %v1054_v37 = vadd.f32 %v617_v36, %v1024_v6  ;;  %v1064_v44 = vsub.f32 %v1024_v6, %v617_v36 }
 0x1f7   :  { %v293_v51 = vmul.f32 1.442695, %v290_v46 }
 0x1f8   :  { %v619_v40 = vpop.permute.xlu0 %618  ;;  %640 = vrot.lane.b32.xlu1 %v1054_v37, %s943_s19  ;;  %v626_v55 = vsub.f32 %v1054_v37, %v1064_v44 }
 0x1f9   :  { %v1059_v41 = vadd.f32 %v619_v40, %v1028_v14  ;;  %v310_v42 = vpop.permute.xlu1 %309  ;;  %v1072_v49 = vsub.f32 %v1028_v14, %v619_v40  ;;  %913 = vpow2.f32 %v293_v51 }
 0x1fa   :  { %v317_v45 = vsub.f32 %v1000_v22, %v310_v42  ;;  %915 = vpow2.f32 %v291_v2 }
 0x1fb   :  { %v627_v58 = vsub.f32 %v1059_v41, %v1072_v49 }
 0x1fc   :  { %642 = vrot.lane.b32.xlu1 %v1059_v41, %s943_s19  ;;  %v319_v50 = vand.u32 2147483647, %v317_v45 }
 0x1fd   :  { %v315_v43 = vpop.permute.xlu1 %314 }
 0x1fe   :  { %vm321_vm15 = vcmp.lt.f32.partialorder %v319_v50, 0.5  ;;  %v318_v0 = vsub.f32 %v1000_v22, %v315_v43 }
 0x1ff   :  { %v799_v57 = vsel %vm321_vm15, 1.0, %v933_v9  ;;  %vm579_vm15 = vcmask 11264  }
 0x200   :  { %650 = vrot.lane.b32.xlu1 %v1064_v44, %s943_s19  ;;  %v327_v60 = vmul.f32 %v799_v57, %v1024_v6  ;;  %v320_v1 = vand.u32 2147483647, %v318_v0 }
 0x201   :  { %v364_v48 = vpop.permute.xlu1 %363 }
 0x202   :  { %v370_v53 = vsel %vm369_vm14, %v364_v48, 0.0  ;;  %v329_v61 = vsel %vm282_vm13, %v327_v60, 0.0  ;;  %vm322_vm1 = vcmp.lt.f32.partialorder %v320_v1, 0.5 }
 0x203   :  { %v914_v62 = vpop.eup %913  ;;  %v800_v3 = vsel %vm322_vm1, 1.0, %v933_v9  ;;  %vm759_vm1 = vcmp.eq.s32.totalorder %v997_v21, 2 }
 0x204   :  { %652 = vrot.lane.b32.xlu1 %v1072_v49, %s943_s19  ;;  %v298_v63 = vsel %vm282_vm13, %v914_v62, 0.0  ;;  %v328_v5 = vmul.f32 %v800_v3, %v1028_v14  ;;  %v916_v8 = vpop.eup %915 }
 0x205   :  { %v366_v52 = vpop.permute.xlu1 %365  ;;  %v295_v22 = vsel %vm282_vm13, %v916_v8, 0.0 }
 0x206   :  { %v371_v54 = vsel %vm369_vm14, %v366_v52, 0.0  ;;  %v332_v7 = vsel %vm282_vm13, %v328_v5, 0.0  ;;  %vm539_vm13 = vcmask 27648   ;;  %vm559_vm14 = vcmask 19456  }
 0x207   :  { %v372_v56 = vadd.f32 %v371_v54, %v370_v53 }
 0x208   :  { %630 = vrot.lane.b32.xlu1 %v626_v55, %s944_s20 }
 0x209   :  { %373 = vadd.xlane.f32.xlu0 %v372_v56 }
 0x20c   :  { %632 = vrot.lane.b32.xlu1 %v627_v58, %s944_s20 }
 0x20d   :  { %453 = vmax.xlane.f32.xlu0 %v452_v59 }
 0x210   :  { %893 = vrot.lane.b32.xlu1 %v974_v12, %s945_s21 }
 0x211   :  { %330 = vadd.xlane.f32.xlu0 %v329_v61 }
 0x215   :  { %299 = vadd.xlane.f32.xlu0 %v298_v63 }
 0x234   :  { %456 = vmax.xlane.f32.xlu1 %v455_v4 }
 0x238   :  { %333 = vadd.xlane.f32.xlu1 %v332_v7 }
 0x23c   :  { %296 = vadd.xlane.f32.xlu1 %v295_v22 }
 0x26a   :  { %v641_v15 = vpop.permute.xlu1 %640 }
 0x26b   :  { %v692_v19 = vmax.f32 %v1054_v37, %v641_v15  ;;  %v646_v29 = vmin.f32 %v1054_v37, %v641_v15  ;;  %v486_v15 = vsel %vm478_vm2, %v970_v11, 0.0 }
 0x26e   :  { %v643_v16 = vpop.permute.xlu1 %642 }
 0x26f   :  { %v647_v40 = vmin.f32 %v1059_v41, %v643_v16 }
 0x272   :  { %v651_v18 = vpop.permute.xlu1 %650 }
 0x273   :  { %v694_v20 = vmin.f32 %v1064_v44, %v651_v18  ;;  %v656_v27 = vmax.f32 %v1064_v44, %v651_v18  ;;  %v693_v44 = vmax.f32 %v1059_v41, %v643_v16  ;;  %v479_v41 = vsel %vm478_vm2, %v967_v10, 0.0 }
 0x274   :  { %v487_v16 = vrot.slane %v486_v15, 4  ;;  %vm762_vm2 = vcmp.eq.s32.totalorder %v997_v21, 3 }
 0x275   :  { %v1100_v23 = vsub.f32 %v692_v19, %v694_v20  ;;  %v1112_v32 = vsub.f32 %v646_v29, %v656_v27 }
 0x276   :  { %v653_v17 = vpop.permute.xlu1 %652  ;;  %v488_v18 = vadd.f32 %v487_v16, %v486_v15 }
 0x277   :  { %v698_v24 = vmax.f32 %v1100_v23, 0.0  ;;  %v657_v33 = vmax.f32 %v1072_v49, %v653_v17  ;;  %v695_v43 = vmin.f32 %v1072_v49, %v653_v17  ;;  %v660_v37 = vmax.f32 %v1112_v32, 0.0 }
 0x278   :  { %v480_v49 = vrot.slane %v479_v41, 4  ;;  %v489_v17 = vrot.slane %v488_v18, 2 }
 0x279   :  { %702 = vrot.lane.b32.xlu1 %v698_v24, %s944_s20  ;;  %v1120_v42 = vsub.f32 %v647_v40, %v657_v33  ;;  %v1128_v45 = vsub.f32 %v693_v44, %v695_v43 }
 0x27a   :  { %v631_v25 = vpop.permute.xlu1 %630  ;;  %v481_v51 = vadd.f32 %v480_v49, %v479_v41 }
 0x27b   :  { %v1107_v28 = vmul.f32 %v631_v25, %v626_v55  ;;  %v661_v46 = vmax.f32 %v1120_v42, 0.0  ;;  %v699_v48 = vmax.f32 %v1128_v45, 0.0 }
 0x27c   :  { %v482_v54 = vrot.slane %v481_v51, 2 }
 0x27d   :  { %674 = vrot.lane.b32.xlu0 %v1107_v28, %s943_s19 }
 0x27e   :  { %v633_v31 = vpop.permute.xlu1 %632 }
 0x27f   :  { %v1115_v36 = vmul.f32 %v633_v31, %v627_v58  ;;  %v483_v58 = vadd.f32 %v482_v54, %v481_v51  ;;  %v490_v31 = vadd.f32 %v489_v17, %v488_v18 }
 0x281   :  { %676 = vrot.lane.b32.xlu0 %v1115_v36, %s943_s19  ;;  %v484_v62 = vrot.slane %v483_v58, 1  ;;  %v491_v44 = vrot.slane %v490_v31, 1 }
 0x282   :  { %v894_v3 = vpop.permute.xlu1 %893 }
 0x283   :  { %v485_v13 = vadd.f32 %v484_v62, %v483_v58  ;;  %v896_v7 = vunpack.i.h.bf16 %v894_v3  ;;  %v492_v51 = vadd.f32 %v491_v44, %v490_v31  ;;  %v895_v58 = vunpack.i.l.bf16 %v894_v3 }
 0x285   :  { %664 = vrot.lane.b32.xlu0 %v660_v37, %s944_s20 }
 0x289   :  { %666 = vrot.lane.b32.xlu0 %v661_v46, %s944_s20 }
 0x28d   :  { %704 = vrot.lane.b32.xlu0 %v699_v48, %s944_s20 }
 0x291   :  { %519 = vrot.lane.b32.xlu0 %v1024_v6, %s943_s19 }
 0x295   :  { %521 = vrot.lane.b32.xlu0 %v1028_v14, %s943_s19 }
 0x296   :  { %v1144_v50 = vpop.xlane.xlu0 %373 }
 0x299   :  { %898 = vrot.lane.b32.xlu0 %v974_v12, %s946_s22 }
 0x29a   :  { %v454_v52 = vpop.xlane.xlu0 %453 }
 0x29b   :  { %v458_v53 = vsub.f32 %v454_v52, %v1037_v26 }
 0x29d   :  { %vm460_vm3 = vcmp.gt.f32.partialorder %v458_v53, -0.35667494 }
 0x29e   :  { %v803_v55 = vsel %vm460_vm3, 1.0, %v933_v9  ;;  %v1149_v56 = vpop.xlane.xlu0 %330  ;;  %vm774_vm3 = vcmp.eq.s32.totalorder %v997_v21, 7 }
 0x29f   :  { %v466_v57 = vrot.slane %v803_v55, 4  ;;  %vm420_vm9 = vcmp.ge.f32.partialorder %v1149_v56, %v1049_v34 }
 0x2a1   :  { %v467_v59 = vadd.f32 %v803_v55, %v466_v57 }
 0x2a2   :  { %v300_v60 = vpop.xlane.xlu0 %299 }
 0x2a3   :  { %v468_v61 = vrot.slane %v467_v59, 2  ;;  %917 = vlog2.f32 %v300_v60 }
 0x2a5   :  { %v469_v63 = vadd.f32 %v468_v61, %v467_v59 }
 0x2a7   :  { %v470_v0 = vrot.slane %v469_v63, 1 }
 0x2a9   :  { %v471_v12 = vadd.f32 %v470_v0, %v469_v63 }
 0x2ab   :  { %v493_v1 = vsub.f32 %v471_v12, %v485_v13 }
 0x2ad   :  { %v918_v2 = vpop.eup %917  ;;  %v495_v26 = vand.u32 2147483647, %v493_v1 }
 0x2ae   :  { %v304_v4 = vmul.f32 0.6931472, %v918_v2 }
 0x2af   :  { %499 = vrot.lane.b32.xlu0 %v495_v26, %s937_s14 }
 0x2b0   :  { %v1153_v5 = vadd.f32 %v304_v4, %v1051_v35 }
 0x2b2   :  { %v336_v8 = vsub.f32 %v1153_v5, %v1028_v14 }
 0x2b4   :  { %v1157_v22 = vmul.f32 %v896_v7, %v336_v8 }
 0x2c1   :  { %v457_v19 = vpop.xlane.xlu1 %456 }
 0x2c2   :  { %v459_v20 = vsub.f32 %v457_v19, %v1041_v30 }
 0x2c4   :  { %vm461_vm4 = vcmp.gt.f32.partialorder %v459_v20, -0.35667494 }
 0x2c5   :  { %v804_v25 = vsel %vm461_vm4, 1.0, %v933_v9  ;;  %v1163_v27 = vpop.xlane.xlu1 %333  ;;  %vm768_vm4 = vcmp.eq.s32.totalorder %v997_v21, 5 }
 0x2c6   :  { %v472_v29 = vrot.slane %v804_v25, 4  ;;  %vm421_vm11 = vcmp.ge.f32.partialorder %v1163_v27, %v1051_v35  ;;  %v338_v20 = vsub.f32 %v1153_v5, %v1163_v27 }
 0x2c8   :  { %v473_v33 = vadd.f32 %v804_v25, %v472_v29 }
 0x2c9   :  { %v297_v40 = vpop.xlane.xlu1 %296 }
 0x2ca   :  { %v474_v43 = vrot.slane %v473_v33, 2  ;;  %919 = vlog2.f32 %v297_v40 }
 0x2cc   :  { %v475_v41 = vadd.f32 %v474_v43, %v473_v33  ;;  %v340_v33 = vmul.f32 %v970_v11, %v338_v20 }
 0x2ce   :  { %v476_v49 = vrot.slane %v475_v41, 1 }
 0x2d0   :  { %v477_v52 = vadd.f32 %v476_v49, %v475_v41 }
 0x2d2   :  { %v494_v53 = vsub.f32 %v477_v52, %v492_v51 }
 0x2d4   :  { %v920_v54 = vpop.eup %919  ;;  %v496_v30 = vand.u32 2147483647, %v494_v53 }
 0x2d5   :  { %v302_v55 = vmul.f32 0.6931472, %v920_v54 }
 0x2d6   :  { %501 = vrot.lane.b32.xlu1 %v496_v30, %s937_s14 }
 0x2d7   :  { %v305_v57 = vadd.f32 %v302_v55, %v1049_v34  ;;  %v802_v34 = vsel %vm421_vm11, 1.0, %v933_v9 }
 0x2d8   :  { %v427_v35 = vmul.f32 %v802_v34, %v970_v11 }
 0x2d9   :  { %v335_v59 = vsub.f32 %v305_v57, %v1024_v6 }
 0x2db   :  { %v1168_v60 = vmul.f32 %v895_v58, %v335_v59 }
 0x2eb   :  { %v703_v2 = vpop.permute.xlu1 %702 }
 0x2ec   :  { %v708_v7 = vmul.f32 %v703_v2, %v698_v24 }
 0x2ee   :  { %vm712_vm6 = vcmp.gt.f32.partialorder %v708_v7, 0.0 }
 0x2ef   :  { %v675_v61 = vpop.permute.xlu0 %674 }
 0x2f0   :  { %v680_v12 = vadd.f32 %v675_v61, %v1107_v28 }
 0x2f3   :  { %v677_v62 = vpop.permute.xlu0 %676 }
 0x2f4   :  { %v681_v15 = vadd.f32 %v677_v62, %v1115_v36 }
 0x2f7   :  { %v665_v63 = vpop.permute.xlu0 %664 }
 0x2f8   :  { %v670_v13 = vmul.f32 %v665_v63, %v660_v37 }
 0x2fa   :  { %v682_v26 = vsub.f32 %v680_v12, %v670_v13 }
 0x2fb   :  { %v667_v0 = vpop.permute.xlu0 %666 }
 0x2fc   :  { %v671_v4 = vmul.f32 %v667_v0, %v661_v46  ;;  %vm684_vm5 = vcmp.gt.f32.partialorder %v682_v26, 0.0 }
 0x2fd   :  { %v686_v18 = vsel %vm684_vm5, %v682_v26, 1.0  ;;  %vm771_vm5 = vcmp.eq.s32.totalorder %v997_v21, 6 }
 0x2fe   :  { %v683_v28 = vsub.f32 %v681_v15, %v671_v4  ;;  %921 = vrcp.f32 %v686_v18 }
 0x2ff   :  { %v705_v1 = vpop.permute.xlu0 %704 }
 0x300   :  { %v709_v32 = vmul.f32 %v705_v1, %v699_v48  ;;  %vm685_vm8 = vcmp.gt.f32.partialorder %v683_v28, 0.0  ;;  %v710_v48 = vsub.f32 %v708_v7, %v682_v26 }
 0x301   :  { %v687_v45 = vsel %vm685_vm8, %v683_v28, 1.0 }
 0x302   :  { %vm713_vm7 = vcmp.gt.f32.partialorder %v709_v32, 0.0 }
 0x303   :  { %v520_v3 = vpop.permute.xlu0 %519  ;;  %v715_v24 = vsel %vm713_vm7, %v709_v32, 1.0 }
 0x304   :  { %v525_v8 = vsub.f32 %v1024_v6, %v520_v3  ;;  %v714_v6 = vsel %vm712_vm6, %v708_v7, 1.0  ;;  %vm765_vm6 = vcmp.eq.s32.totalorder %v997_v21, 4 }
 0x305   :  { %923 = vrcp.f32 %v714_v6 }
 0x306   :  { %v527_v37 = vand.u32 2147483647, %v525_v8  ;;  %925 = vrcp.f32 %v715_v24 }
 0x307   :  { %v522_v16 = vpop.permute.xlu0 %521  ;;  %927 = vrcp.f32 %v687_v45 }
 0x308   :  { %v529_v42 = vmul.f32 %v884_v39, %v527_v37  ;;  %v526_v46 = vsub.f32 %v1028_v14, %v522_v16  ;;  %v801_v39 = vsel %vm420_vm9, 1.0, %v933_v9  ;;  %v922_v14 = vpop.eup %921 }
 0x309   :  { %v426_v38 = vmul.f32 %v801_v39, %v967_v10  ;;  %v689_v17 = vmul.f32 %v922_v14, %v670_v13 }
 0x30a   :  { %v528_v23 = vand.u32 2147483647, %v526_v46  ;;  %533 = vrot.lane.b32.xlu0 %v529_v42, %s947_s23 }
 0x30b   :  { %v899_v44 = vpop.permute.xlu0 %898 }
 0x30c   :  { %v530_v36 = vmul.f32 %v885_v47, %v528_v23  ;;  %v337_v47 = vsub.f32 %v305_v57, %v1149_v56  ;;  %v711_v56 = vsub.f32 %v709_v32, %v683_v28  ;;  %v900_v27 = vunpack.i.l.bf16 %v899_v44 }
 0x30d   :  { %v901_v51 = vunpack.i.h.bf16 %v899_v44 }
 0x30e   :  { %535 = vrot.lane.b32.xlu0 %v530_v36, %s947_s23  ;;  %555 = vrot.lane.b32.xlu1 %v530_v36, %s948_s24  ;;  %v339_v25 = vmul.f32 %v967_v10, %v337_v47 }
 0x30f   :  { %v924_v19 = vpop.eup %923 }
 0x310   :  { %v926_v29 = vpop.eup %925  ;;  %v717_v31 = vmul.f32 %v924_v19, %v710_v48 }
 0x311   :  { %v928_v9 = vpop.eup %927  ;;  %v719_v43 = vmul.f32 %v926_v29, %v711_v56 }
 0x312   :  { %553 = vrot.lane.b32.xlu0 %v529_v42, %s948_s24  ;;  %575 = vrot.lane.b32.xlu1 %v530_v36, %s943_s19  ;;  %v720_v40 = vsub.f32 %v689_v17, %v717_v31  ;;  %v691_v41 = vmul.f32 %v928_v9, %v671_v4 }
 0x314   :  { %v722_v10 = vsub.f32 1.0, %v720_v40  ;;  %v721_v5 = vsub.f32 %v691_v41, %v719_v43 }
 0x316   :  { %573 = vrot.lane.b32.xlu0 %v529_v42, %s943_s19  ;;  %430 = vrot.lane.b32.xlu1 %v426_v38, %s937_s14  ;;  %v723_v49 = vsub.f32 1.0, %v721_v5  ;;  %v730_v11 = vmul.f32 %v900_v27, %v722_v10 }
 0x318   :  { %v731_v52 = vmul.f32 %v901_v51, %v723_v49 }
 0x31a   :  { %432 = vrot.lane.b32.xlu1 %v427_v35, %s937_s14  ;;  %343 = vrot.lane.b32.xlu0 %v339_v25, %s937_s14  ;;  %v375_v25 = vrot.slane %v1144_v50, 4 }
 0x31c   :  { %v376_v56 = vadd.f32 %v375_v25, %v1144_v50 }
 0x31e   :  { %345 = vrot.lane.b32.xlu1 %v340_v33, %s937_s14  ;;  %392 = vrot.lane.b32.xlu0 %v1168_v60, %s942_s18  ;;  %v377_v41 = vrot.slane %v376_v56, 2 }
 0x321   :  { %v500_v53 = vpop.permute.xlu0 %499 }
 0x322   :  { %394 = vrot.lane.b32.xlu1 %v1157_v22, %s942_s18  ;;  %593 = vrot.lane.b32.xlu0 %v529_v42, %s949_s25  ;;  %v506_v30 = vsel %vm505_vm12, %v500_v53, 0.0  ;;  %v416_v53 = vstv %s414_s28 }
 0x323   :  { %929 = vrcp.f32 %v416_v53 }
 0x326   :  { %595 = vrot.lane.b32.xlu1 %v530_v36, %s949_s25  ;;  %734 = vrot.lane.b32.xlu0 %v730_v11, %s947_s23 }
 0x32a   :  { %736 = vrot.lane.b32.xlu1 %v731_v52, %s947_s23 }
 0x348   :  { %v502_v54 = vpop.permute.xlu1 %501 }
 0x349   :  { %v507_v55 = vsel %vm505_vm12, %v502_v54, 0.0 }
 0x34a   :  { %v508_v57 = vadd.f32 %v507_v55, %v506_v30 }
 0x34c   :  { %509 = vadd.xlane.f32.xlu0 %v508_v57  ;;  %v378_v57 = vadd.f32 %v377_v41, %v376_v56 }
 0x37c   :  { %v534_v58 = vpop.permute.xlu0 %533 }
 0x37d   :  { %v540_v60 = vsel %vm539_vm13, %v534_v58, 0.0 }
 0x380   :  { %v536_v22 = vpop.permute.xlu0 %535  ;;  %v556_v59 = vpop.permute.xlu1 %555 }
 0x381   :  { %v541_v61 = vsel %vm539_vm13, %v536_v22, 0.0  ;;  %v561_v13 = vsel %vm559_vm14, %v556_v59, 0.0 }
 0x382   :  { %v542_v62 = vadd.f32 %v541_v61, %v540_v60 }
 0x384   :  { %v554_v63 = vpop.permute.xlu0 %553  ;;  %v576_v0 = vpop.permute.xlu1 %575  ;;  %543 = vadd.xlane.f32.xlu1 %v542_v62 }
 0x385   :  { %v560_v12 = vsel %vm559_vm14, %v554_v63, 0.0  ;;  %v581_v39 = vsel %vm579_vm15, %v576_v0, 0.0 }
 0x386   :  { %v562_v1 = vadd.f32 %v561_v13, %v560_v12  ;;  %v379_v13 = vrot.slane %v378_v57, 1 }
 0x388   :  { %v574_v2 = vpop.permute.xlu0 %573  ;;  %v431_v26 = vpop.permute.xlu1 %430  ;;  %563 = vadd.xlane.f32.xlu0 %v562_v1 }
 0x389   :  { %v436_v7 = vsel %vm29_vm10, %v431_v26, 0.0  ;;  %v580_v36 = vsel %vm579_vm15, %v574_v2, 0.0 }
 0x38a   :  { %v582_v34 = vadd.f32 %v581_v39, %v580_v36 }
 0x38c   :  { %v344_v4 = vpop.permute.xlu0 %343  ;;  %v433_v3 = vpop.permute.xlu1 %432 }
 0x38d   :  { %v437_v8 = vsel %vm29_vm10, %v433_v3, 0.0  ;;  %v349_v28 = vsel %vm29_vm10, %v344_v4, 0.0 }
 0x38e   :  { %v438_v15 = vadd.f32 %v437_v8, %v436_v7 }
 0x390   :  { %v346_v32 = vpop.permute.xlu1 %345  ;;  %439 = vadd.xlane.f32.xlu1 %v438_v15  ;;  %v393_v37 = vpop.permute.xlu0 %392 }
 0x391   :  { %v350_v16 = vsel %vm29_vm10, %v346_v32, 0.0  ;;  %v398_v23 = vsel %vm29_vm10, %v393_v37, 0.0 }
 0x392   :  { %v351_v18 = vadd.f32 %v350_v16, %v349_v28  ;;  %v380_v16 = vadd.f32 %v379_v13, %v378_v57 }
 0x394   :  { %v395_v42 = vpop.permute.xlu1 %394  ;;  %352 = vadd.xlane.f32.xlu0 %v351_v18  ;;  %v594_v46 = vpop.permute.xlu0 %593 }
 0x395   :  { %v399_v6 = vsel %vm29_vm10, %v395_v42, 0.0  ;;  %v599_v38 = vsel %vm29_vm10, %v594_v46, 0.0 }
 0x396   :  { %v400_v24 = vadd.f32 %v399_v6, %v398_v23 }
 0x398   :  { %v596_v45 = vpop.permute.xlu1 %595  ;;  %401 = vadd.xlane.f32.xlu0 %v400_v24  ;;  %v735_v14 = vpop.permute.xlu0 %734 }
 0x399   :  { %v600_v47 = vsel %vm29_vm10, %v596_v45, 0.0  ;;  %v740_v20 = vsel %vm29_vm10, %v735_v14, 0.0 }
 0x39a   :  { %v601_v48 = vadd.f32 %v600_v47, %v599_v38 }
 0x39c   :  { %v737_v19 = vpop.permute.xlu1 %736  ;;  %583 = vadd.xlane.f32.xlu0 %v582_v34  ;;  %602 = vadd.xlane.f32.xlu1 %v601_v48  ;;  %v930_v48 = vpop.eup %929 }
 0x39d   :  { %v741_v35 = vsel %vm29_vm10, %v737_v19, 0.0  ;;  %vm753_vm10 = vcmp.eq.s32.totalorder %v997_v21, 0 }
 0x39e   :  { %v742_v17 = vadd.f32 %v741_v35, %v740_v20 }
 0x3a0   :  { %743 = vadd.xlane.f32.xlu0 %v742_v17 }
 0x3d9   :  { %v510_v29 = vpop.xlane.xlu0 %509 }
 0x3da   :  { %v511_v43 = vrot.slane %v510_v29, 4 }
 0x3dc   :  { %v512_v51 = vadd.f32 %v511_v43, %v510_v29 }
 0x3de   :  { %v513_v22 = vrot.slane %v512_v51, 2 }
 0x3e0   :  { %v514_v3 = vadd.f32 %v513_v22, %v512_v51 }
 0x3e2   :  { %v515_v36 = vrot.slane %v514_v3, 1 }
 0x3e4   :  { %v516_v25 = vadd.f32 %v515_v36, %v514_v3 }
 0x411   :  { %v544_v31 = vpop.xlane.xlu1 %543 }
 0x412   :  { %v545_v44 = vrot.slane %v544_v31, 4 }
 0x414   :  { %v546_v11 = vadd.f32 %v545_v44, %v544_v31 }
 0x415   :  { %v564_v9 = vpop.xlane.xlu0 %563 }
 0x416   :  { %v565_v10 = vrot.slane %v564_v9, 4  ;;  %v547_v59 = vrot.slane %v546_v11, 2 }
 0x418   :  { %v566_v54 = vadd.f32 %v565_v10, %v564_v9  ;;  %v548_v7 = vadd.f32 %v547_v59, %v546_v11 }
 0x41a   :  { %v567_v62 = vrot.slane %v566_v54, 2  ;;  %v549_v45 = vrot.slane %v548_v7, 1 }
 0x41c   :  { %v568_v42 = vadd.f32 %v567_v62, %v566_v54  ;;  %v550_v31 = vadd.f32 %v549_v45, %v548_v7 }
 0x41d   :  { %v440_v33 = vpop.xlane.xlu1 %439 }
 0x41e   :  { %v441_v40 = vrot.slane %v440_v33, 4  ;;  %v569_v34 = vrot.slane %v568_v42, 1 }
 0x420   :  { %v442_v5 = vadd.f32 %v441_v40, %v440_v33  ;;  %v570_v9 = vadd.f32 %v569_v34, %v568_v42 }
 0x421   :  { %v353_v27 = vpop.xlane.xlu0 %352 }
 0x422   :  { %v354_v49 = vrot.slane %v353_v27, 4  ;;  %v443_v30 = vrot.slane %v442_v5, 2 }
 0x424   :  { %v355_v52 = vadd.f32 %v354_v49, %v353_v27  ;;  %v444_v12 = vadd.f32 %v443_v30, %v442_v5 }
 0x425   :  { %v402_v55 = vpop.xlane.xlu0 %401 }
 0x426   :  { %v356_v50 = vrot.slane %v355_v52, 2  ;;  %v403_v58 = vrot.slane %v402_v55, 4  ;;  %v445_v18 = vrot.slane %v444_v12, 1 }
 0x428   :  { %v404_v60 = vadd.f32 %v403_v58, %v402_v55  ;;  %v357_v61 = vadd.f32 %v356_v50, %v355_v52  ;;  %v446_v20 = vadd.f32 %v445_v18, %v444_v12 }
 0x429   :  { %v603_v63 = vpop.xlane.xlu1 %602  ;;  %v584_v0 = vpop.xlane.xlu0 %583 }
 0x42a   :  { %v405_v1 = vrot.slane %v404_v60, 2  ;;  %v604_v2 = vrot.slane %v603_v63, 4  ;;  %v585_v26 = vrot.slane %v584_v0, 4  ;;  %v358_v4 = vrot.slane %v357_v61, 1 }
 0x42c   :  { %v605_v8 = vadd.f32 %v604_v2, %v603_v63  ;;  %v586_v15 = vadd.f32 %v585_v26, %v584_v0  ;;  %v359_v32 = vadd.f32 %v358_v4, %v357_v61  ;;  %v406_v37 = vadd.f32 %v405_v1, %v404_v60 }
 0x42d   :  { %v744_v28 = vpop.xlane.xlu0 %743 }
 0x42e   :  { %v606_v46 = vrot.slane %v605_v8, 2  ;;  %v587_v23 = vrot.slane %v586_v15, 2  ;;  %v745_v6 = vrot.slane %v744_v28, 4  ;;  %837 = vpush %v359_v32  ;;  %v407_v24 = vrot.slane %v406_v37, 1 }
 0x42f   :  { %839 = vpush %v380_v16 }
 0x430   :  { %v607_v39 = vadd.f32 %v606_v46, %v605_v8  ;;  %v746_v38 = vadd.f32 %v745_v6, %v744_v28  ;;  %v408_v47 = vadd.f32 %v407_v24, %v406_v37  ;;  %v588_v14 = vadd.f32 %v587_v23, %v586_v15 }
 0x432   :  { %v747_v19 = vrot.slane %v746_v38, 2  ;;  %841 = vpush %v408_v47  ;;  %v589_v35 = vrot.slane %v588_v14, 1  ;;  %v608_v17 = vrot.slane %v607_v39, 1 }
 0x433   :  { %843 = vpush %v930_v48 }
 0x434   :  { %v748_v29 = vadd.f32 %v747_v19, %v746_v38  ;;  %845 = vpush %v446_v20  ;;  %v590_v56 = vadd.f32 %v589_v35, %v588_v14  ;;  %v609_v33 = vadd.f32 %v608_v17, %v607_v39 }
 0x435   :  { %847 = vpush %v516_v25 }
 0x436   :  { %849 = vpush %v550_v31  ;;  %v749_v40 = vrot.slane %v748_v29, 1 }
 0x437   :  { %851 = vpush %v570_v9 }
 0x438   :  { %853 = vpush %v590_v56  ;;  %v750_v43 = vadd.f32 %v749_v40, %v748_v29 }
 0x439   :  { %855 = vpush %v609_v33 }
 0x43a   :  { %857 = vpush %v750_v43 }
 0x45f   :  { %s838_s30 = spop %837 }
 0x460   :  { %s840_s2 = spop %839 }
 0x463   :  { %s842_s3 = spop %841 }
 0x464   :  { %s410_s4 = ssub.f32 %s840_s2, %s842_s3  ;;  %s844_s5 = spop %843 }
 0x465   :  { %s846_s6 = spop %845 }
 0x466   :  { %s411_s7 = smul.f32 0.1, %s410_s4  ;;  %s848_s8 = spop %847 }
 0x467   :  { %s448_s9 = smul.f32 100.0, %s846_s6  ;;  %s850_s10 = spop %849 }
 0x468   :  { %s415_s11 = sadd.f32 %s838_s30, %s411_s7  ;;  %s518_s12 = smul.f32 0.5, %s848_s8 }
 0x469   :  { %s449_s13 = smul.f32 %s1227_s29, %s448_s9  ;;  %s852_s14 = spop %851 }
 0x46a   :  { %s419_s0 = smul.f32 %s844_s5, %s415_s11  ;;  %s854_s15 = spop %853  ;;  %v760_v41 = vstv %s518_s12 }
 0x46b   :  { %s450_s16 = ssub.f32 100.0, %s449_s13  ;;  %s552_s17 = smul.f32 %s850_s10, %s1227_s29  ;;  %v761_v49 = vsel %vm759_vm1, %v760_v41, 0.0 }
 0x46c   :  { %v754_v44 = vstv %s419_s0  ;;  %s572_s18 = smul.f32 %s852_s14, %s1227_s29  ;;  %s856_s19 = spop %855 }
 0x46d   :  { %v757_v10 = vstv %s450_s16  ;;  %v763_v5 = vstv %s552_s17  ;;  %s592_s20 = smul.f32 %s854_s15, %s1227_s29  ;;  %s858_s21 = spop %857  ;;  %v755_v27 = vsel %vm753_vm10, %v754_v44, 0.0 }
 0x46e   :  { %s611_s22 = smul.f32 %s856_s19, %s1227_s29  ;;  %v769_v51 = vstv %s572_s18  ;;  %v758_v52 = vsel %vm756_vm0, %v757_v10, 0.0  ;;  %v764_v53 = vsel %vm762_vm2, %v763_v5, 0.0 }
 0x46f   :  { %v775_v11 = vstv %s592_s20  ;;  %s752_s23 = smul.f32 %s858_s21, %s1227_s29  ;;  %v777_v55 = vadd.f32 %v758_v52, %v755_v27  ;;  %v770_v58 = vsel %vm768_vm4, %v769_v51, 0.0  ;;  %v778_v59 = vadd.f32 %v764_v53, %v761_v49 }
 0x470   :  { %v776_v54 = vsel %vm774_vm3, %v775_v11, 0.0  ;;  %v772_v30 = vstv %s611_s22 }
 0x471   :  { %v773_v57 = vsel %vm771_vm5, %v772_v30, 0.0  ;;  %v766_v50 = vstv %s752_s23  ;;  %v781_v62 = vadd.f32 %v778_v59, %v777_v55 }
 0x472   :  { %v767_v22 = vsel %vm765_vm6, %v766_v50, 0.0  ;;  %v780_v60 = vadd.f32 %v776_v54, %v773_v57 }
 0x473   :  { %v779_v61 = vadd.f32 %v770_v58, %v767_v22 }
 0x475   :  { %v782_v63 = vadd.f32 %v780_v60, %v779_v61 }
 0x477   :  { %v783_v0 = vadd.f32 %v782_v63, %v781_v62 }
 0x479   :  { %784 = vst [vmem:[%s1249_s1] sm:$0x1] %v783_v0 }

</bundles_post_ra>
